<compile_context>
chip_gen: v7x
topology: tpu7x:2x2x1
jax: 0.10.0
libtpu: 0.0.40
codegen_flags: <defaults>
</compile_context>

<pallas_src>
import functools
import math

import jax
import jax.numpy as jnp
from jax import lax
from jax.experimental import pallas as pl
from jax.experimental.pallas import tpu as pltpu


def _round_up(x: int, m: int) -> int:
    return ((x + m - 1) // m) * m


def _sublane_min(dtype) -> int:
    # (8,128) tiles for 4-byte, (16,128) for 2-byte, (32,128) for 1-byte dtypes.
    itemsize = jnp.dtype(dtype).itemsize
    return max(8, 32 // max(itemsize, 1))


def _linear_kernel(x_ref, w_ref, o_ref, acc_ref, *, precision):
    """One (tm, tn) output tile; grid axis 2 is the K reduction."""

    @pl.when(pl.program_id(2) == 0)
    def _init():
        acc_ref[...] = jnp.zeros_like(acc_ref)

    # x tile: (tm, tk); w tile: (tn, tk) in the native PyTorch layout.
    # Contract both on their last axis -> MXU consumes the stationary operand
    # transposed internally; no HBM or XLU transpose required.
    acc_ref[...] += lax.dot_general(
        x_ref[...],
        w_ref[...],
        dimension_numbers=(((1,), (1,)), ((), ())),
        preferred_element_type=jnp.float32,
        precision=precision,
    )

    @pl.when(pl.program_id(2) == pl.num_programs(2) - 1)
    def _store():
        o_ref[...] = acc_ref[...].astype(o_ref.dtype)


def _tpu_defaults():
    """(tm, tn, tk) preferences, VMEM limit and 2-TC flag for the local device."""
    try:
        kind = jax.devices()[0].device_kind.lower()
    except Exception:  # pragma: no cover - defensive
        kind = ""
    try:
        vmem_cap = int(pltpu.get_tpu_info().vmem_capacity_bytes)
    except Exception:  # pragma: no cover - defensive
        vmem_cap = 64 << 20  # conservative: v7x per-TC size

    two_cores = ("v7" in kind) or ("7x" in kind)

    if ("v5 lite" in kind) or ("v5e" in kind) or ("v5lite" in kind):
        # v5e: 4x128x128 MXU, ~240 flop/byte balance point -> 512 tiles suffice.
        prefs = (512, 512, 1024)
    else:
        # v6e/v7x: 2x256x256 MXU; large tiles to reach the MXU roofline.
        prefs = (1024, 1024, 2048)

    # ~96 MiB on 128-MiB VMEM parts (v5e/v6e), ~48 MiB on v7x (64 MiB/TC).
    vmem_limit = max(16 << 20, (vmem_cap * 3) // 4)
    return prefs, vmem_limit, two_cores


def linear_forward(x, weight, *, tm=None, tn=None, tk=None,
                   precision=None, out_dtype=None):
    """y = x @ weight.T with arbitrary leading dims on x.

    x:      (..., d_in)
    weight: (d_out, d_in)   (PyTorch Linear convention, NOT transposed here)
    returns (..., d_out)
    """
    *lead, d_in = x.shape
    d_out, d_in_w = weight.shape
    assert d_in == d_in_w, (d_in, d_in_w)

    m = int(math.prod(lead)) if lead else 1
    x2 = x.reshape(m, d_in)

    out_dtype = (jnp.dtype(out_dtype) if out_dtype is not None
                 else jnp.promote_types(x.dtype, weight.dtype))
    x_item = jnp.dtype(x.dtype).itemsize
    w_item = jnp.dtype(weight.dtype).itemsize
    o_item = jnp.dtype(out_dtype).itemsize

    (tm_d, tn_d, tk_d), vmem_limit, two_cores = _tpu_defaults()
    tm = tm_d if tm is None else tm
    tn = tn_d if tn is None else tn
    tk = tk_d if tk is None else tk

    tm_align = max(_sublane_min(x.dtype), _sublane_min(out_dtype))
    tn_align = max(128, _sublane_min(weight.dtype))
    tk_align = 128

    # Clamp tile preferences to the (rounded-up) problem size.
    tm_ = min(tm, _round_up(m, tm_align))
    tn_ = min(tn, _round_up(d_out, tn_align))
    tk_ = min(tk, _round_up(d_in, tk_align))

    # Fit: double-buffered input/output tiles + f32 accumulator must fit in the
    # VMEM budget (with headroom for compiler scratch). Shrink K, then N, then M.
    def tile_bytes(a, b, c):
        return 2 * (a * c * x_item + b * c * w_item + a * b * o_item) + a * b * 4

    budget = vmem_limit - (8 << 20)
    while tile_bytes(tm_, tn_, tk_) > budget and tk_ > 512:
        tk_ = max(512, _round_up(tk_ // 2, tk_align))
    while tile_bytes(tm_, tn_, tk_) > budget and tn_ > 256:
        tn_ = max(256, _round_up(tn_ // 2, 128))
    while tile_bytes(tm_, tn_, tk_) > budget and tm_ > 256:
        tm_ = max(256, _round_up(tm_ // 2, tm_align))

    mp = _round_up(m, tm_)
    np_ = _round_up(d_out, tn_)
    kp = _round_up(d_in, tk_)

    # v7x has 2 TensorCores: make sure the "parallel" grid axes have >= 2 cells.
    if two_cores and (mp // tm_) * (np_ // tn_) < 2 and tn_ > 128:
        tn_ = max(128, _round_up(tn_ // 2, 128))
        np_ = _round_up(d_out, tn_)

    # Zero-pad only the dims that need it (K tail contributes 0 to the sum;
    # extra M/N rows/cols are sliced off below).
    if (mp, kp) != (m, d_in):
        x2 = jnp.pad(x2, ((0, mp - m), (0, kp - d_in)))
    w = weight
    if (np_, kp) != (d_out, d_in):
        w = jnp.pad(w, ((0, np_ - d_out), (0, kp - d_in)))

    grid = (mp // tm_, np_ // tn_, kp // tk_)
    gi, gj, _ = grid

    cost = pl.CostEstimate(
        flops=2 * m * d_in * d_out,
        transcendentals=0,
        # Honest re-read factors: x is streamed once per N tile, weight once
        # per M tile, output written once.
        bytes_accessed=(mp * kp * gj * x_item
                        + np_ * kp * gi * w_item
                        + mp * np_ * o_item),
    )

    kernel = functools.partial(_linear_kernel, precision=precision)

    out = pl.pallas_call(
        kernel,
        out_shape=jax.ShapeDtypeStruct((mp, np_), out_dtype),
        grid_spec=pltpu.PrefetchScalarGridSpec(
            num_scalar_prefetch=0,
            grid=grid,
            in_specs=[
                pl.BlockSpec((tm_, tk_), lambda i, j, k: (i, k)),   # x tile
                pl.BlockSpec((tn_, tk_), lambda i, j, k: (j, k)),   # weight tile (un-transposed)
            ],
            out_specs=pl.BlockSpec((tm_, tn_), lambda i, j, k: (i, j)),
            scratch_shapes=[pltpu.VMEM((tm_, tn_), jnp.float32)],
        ),
        compiler_params=pltpu.CompilerParams(
            dimension_semantics=("parallel", "parallel", "arbitrary"),
            vmem_limit_bytes=int(vmem_limit),
        ),
        cost_estimate=cost,
    )(x2, w)

    out = out[:m, :d_out]
    return out.reshape(*lead, d_out)


def init_linear_weight(key, in_features, out_features, dtype=jnp.float32):
    """Matches nn.init.trunc_normal_(w, mean=0, std=sqrt(2/(in+out)), a=-3*std, b=3*std)."""
    std = (2.0 / (in_features + out_features)) ** 0.5
    w = jax.random.truncated_normal(
        key, lower=-3.0, upper=3.0,
        shape=(out_features, in_features), dtype=jnp.float32,
    ) * std
    return w.astype(dtype)


if __name__ == "__main__":
    key = jax.random.PRNGKey(0)
    keys = jax.random.split(key, 6)

    # Case 1: small shapes straight from the module spec.
    batch, seq, d_in, d_out = 2, 8, 32, 64
    x = jax.random.normal(keys[0], (batch, seq, d_in), dtype=jnp.float32)
    weight = init_linear_weight(keys[1], d_in, d_out)
    y = linear_forward(x, weight)
    jax.block_until_ready(y)
    y_ref = jnp.einsum("bsd,od->bso", x, weight, precision=lax.Precision.HIGHEST)
    assert y.shape == (batch, seq, d_out)
    assert jnp.allclose(y, y_ref, atol=1e-3, rtol=1e-3)

    # Case 2: force multi-step K reduction and multiple M/N tiles (exercises
    # the accumulator init/finalize path) at small absolute sizes.
    d_in2, d_out2 = 256, 384
    x_b = jax.random.normal(keys[2], (batch, seq, d_in2), dtype=jnp.float32)
    weight_b = init_linear_weight(keys[3], d_in2, d_out2)
    y_b = linear_forward(x_b, weight_b, tm=16, tn=128, tk=128)
    jax.block_until_ready(y_b)
    y_b_ref = jnp.einsum("bsd,od->bso", x_b, weight_b,
                         precision=lax.Precision.HIGHEST)
    assert y_b.shape == (batch, seq, d_out2)
    assert jnp.allclose(y_b, y_b_ref, atol=1e-3, rtol=1e-3)

    # Case 3: ragged / unaligned dims exercise the zero-pad + slice path.
    x_c = jax.random.normal(keys[4], (3, 5, 100), dtype=jnp.float32)
    weight_c = init_linear_weight(keys[5], 100, 70)
    y_c = linear_forward(x_c, weight_c)
    jax.block_until_ready(y_c)
    y_c_ref = jnp.einsum("bsd,od->bso", x_c, weight_c,
                         precision=lax.Precision.HIGHEST)
    assert y_c.shape == (3, 5, 70)
    assert jnp.allclose(y_c, y_c_ref, atol=1e-3, rtol=1e-3)

    print("KERNEL_OK")
</pallas_src>

<mosaic_0001>
module attributes {stable_mosaic.version = 11 : i64} {
  func.func @_linear_kernel(%arg0: i32, %arg1: i32, %arg2: i32, %arg3: memref<16x128xf32, #tpu.memory_space<vmem>>, %arg4: memref<128x128xf32, #tpu.memory_space<vmem>>, %arg5: memref<16x128xf32, #tpu.memory_space<vmem>>, %arg6: memref<16x128xf32, #tpu.memory_space<vmem>>) attributes {dimension_semantics = [#tpu.dimension_semantics<parallel>, #tpu.dimension_semantics<parallel>, #tpu.dimension_semantics<arbitrary>], iteration_bounds = array<i64: 1, 1, 1>, scalar_prefetch = 0 : i64, scratch_operands = 1 : i64, tpu.core_type = #tpu.core_type<tc>, window_params = [{transform_indices = @transform_0, window_bounds = array<i64: 16, 128>}, {transform_indices = @transform_1, window_bounds = array<i64: 128, 128>}, {transform_indices = @transform_2, window_bounds = array<i64: 16, 128>}]} {
    %c0_i32 = arith.constant 0 : i32
    %0 = arith.cmpi eq, %arg2, %c0_i32 : i32
    %1 = arith.extui %0 : i1 to i32
    %c0_i32_0 = arith.constant 0 : i32
    %2 = arith.cmpi ne, %1, %c0_i32_0 : i32
    scf.if %2 {
      %cst_10 = arith.constant 0.000000e+00 : f32
      %12 = vector.broadcast %cst_10 : f32 to vector<16x128xf32>
      %c0_11 = arith.constant 0 : index
      %c0_12 = arith.constant 0 : index
      %13 = vector.load %arg6[%c0_11, %c0_12] : memref<16x128xf32, #tpu.memory_space<vmem>>, vector<16x128xf32>
      tpu.vector_store %arg6[%c0_11, %c0_12], %12 {strides = array<i32>} : memref<16x128xf32, #tpu.memory_space<vmem>>, vector<16x128xf32>,
    } else {
    }
    %c0 = arith.constant 0 : index
    %c0_1 = arith.constant 0 : index
    %3 = vector.load %arg6[%c0, %c0_1] : memref<16x128xf32, #tpu.memory_space<vmem>>, vector<16x128xf32>
    %c0_2 = arith.constant 0 : index
    %c0_3 = arith.constant 0 : index
    %4 = vector.load %arg3[%c0_2, %c0_3] : memref<16x128xf32, #tpu.memory_space<vmem>>, vector<16x128xf32>
    %c0_4 = arith.constant 0 : index
    %c0_5 = arith.constant 0 : index
    %5 = vector.load %arg4[%c0_4, %c0_5] : memref<128x128xf32, #tpu.memory_space<vmem>>, vector<128x128xf32>
    %cst = arith.constant dense<0.000000e+00> : vector<16x128xf32>
    %6 = tpu.matmul %4, %5, %cst {dimension_numbers = #tpu.dot_dimension_numbers<[1], [1], [0], [0], [0, 0, 1, 0], [], []>} : vector<16x128xf32>, vector<128x128xf32>, vector<16x128xf32> -> vector<16x128xf32>
    %7 = arith.addf %3, %6 : vector<16x128xf32>
    %c0_6 = arith.constant 0 : index
    %c0_7 = arith.constant 0 : index
    %8 = vector.load %arg6[%c0_6, %c0_7] : memref<16x128xf32, #tpu.memory_space<vmem>>, vector<16x128xf32>
    tpu.vector_store %arg6[%c0_6, %c0_7], %7 {strides = array<i32>} : memref<16x128xf32, #tpu.memory_space<vmem>>, vector<16x128xf32>,
    %c0_i32_8 = arith.constant 0 : i32
    %9 = arith.cmpi eq, %arg2, %c0_i32_8 : i32
    %10 = arith.extui %9 : i1 to i32
    %c0_i32_9 = arith.constant 0 : i32
    %11 = arith.cmpi ne, %10, %c0_i32_9 : i32
    scf.if %11 {
      %c0_10 = arith.constant 0 : index
      %c0_11 = arith.constant 0 : index
      %12 = vector.load %arg6[%c0_10, %c0_11] : memref<16x128xf32, #tpu.memory_space<vmem>>, vector<16x128xf32>
      %c0_12 = arith.constant 0 : index
      %c0_13 = arith.constant 0 : index
      %13 = vector.load %arg5[%c0_12, %c0_13] : memref<16x128xf32, #tpu.memory_space<vmem>>, vector<16x128xf32>
      tpu.vector_store %arg5[%c0_12, %c0_13], %12 {strides = array<i32>} : memref<16x128xf32, #tpu.memory_space<vmem>>, vector<16x128xf32>,
    } else {
    }
    return
  }
  func.func @transform_0(%arg0: i32, %arg1: i32, %arg2: i32) -> (i32, i32) {
    %c0_i32 = arith.constant 0 : i32
    return %arg0, %arg2 : i32, i32
  }
  func.func @transform_1(%arg0: i32, %arg1: i32, %arg2: i32) -> (i32, i32) {
    %c0_i32 = arith.constant 0 : i32
    return %arg1, %arg2 : i32, i32
  }
  func.func @transform_2(%arg0: i32, %arg1: i32, %arg2: i32) -> (i32, i32) {
    %c0_i32 = arith.constant 0 : i32
    return %arg0, %arg1 : i32, i32
  }
}

</mosaic_0001>

<bundles_post_ra>
// kernel: tpu_custom_call.1
= control target key start
LH: loop header
LB: loop body
LE: loop exit
PB: predicated region body
PF: predicated region fallthrough
CT: control target
= control target key end

     0   :  { %7 = vsyncpa [#allocation4], 0  ;;  %s397_s0 = inlined_call_operand.hbm [shape: f32[16,128], index: 0, kind: input, shape index: {}]   ;;  %s398_s1 = inlined_call_operand.hbm [shape: f32[128,128], index: 1, kind: input, shape index: {}]   ;;  %s399_s2 = inlined_call_operand.hbm [shape: f32[16,128], index: 2, kind: output, shape index: {}]  }
   0x1   :  { %8 = vsyncpa [#allocation7], 0 }
   0x2   :  { %9 = vsyncpa [#allocation5], 0  ;;  %s332_s9 = smov [#allocation3]   ;;  %s260_s13 = scalar_lea.hbm %s397_s0, 256 }
   0x3   :  { %s15_s10 = sshll.u32 %s332_s9, 4  ;;  %p261_p0 = scmp.ne.s32.totalorder %s397_s0, %s260_s13  ;;  %s16_s10 = int_to_ptr.vmem [resolvable:$true] %s15_s10 }
   0x4   :  { %p264_p1 = scmp.lt.u32.totalorder %s260_s13, %s397_s0 }
   0x6   :  { %p266_p2 = pnand %p264_p1, %p261_p0 }
   0x8   :  { %269 = shalt.err (!%p266_p2)
}
   0x9   :  { %s270_s18 = scalar_lea.vmem %s16_s10, 256  ;;  %p275_p4 = scmp.lt.s32.totalorder %s16_s10, %s16_s10 }
   0xa   :  { %p271_p3 = scmp.ne.s32.totalorder %s16_s10, %s270_s18  ;;  %p276_p5 = scmp.lt.s32.totalorder %s270_s18, %s270_s18 }
   0xc   :  { %p277_p6 = por %p276_p5, %p275_p4 }
   0xe   :  { %p278_p7 = pnand %p277_p6, %p271_p3 }
  0x10   :  { %281 = shalt.err (!%p278_p7)
}
  0x11   :  { %s333_s19 = smov 128   ;;  %s334_s20 = smov 8  }
  0x12   :  { %21 = dma.hbm_to_vmem [thread:$0]  %s397_s0, 256, %s16_s10, [#allocation4], %s333_s19, %s333_s19, %s334_s20  }
  0x13   :  { %s335_s23 = smov [#allocation6]   ;;  %s282_s27 = scalar_lea.hbm %s398_s1, 2048 }
  0x14   :  { %s27_s24 = sshll.u32 %s335_s23, 4  ;;  %p283_p8 = scmp.ne.s32.totalorder %s398_s1, %s282_s27  ;;  %s28_s24 = int_to_ptr.vmem [resolvable:$true] %s27_s24 }
  0x15   :  { %p286_p9 = scmp.lt.u32.totalorder %s282_s27, %s398_s1 }
  0x17   :  { %p288_p10 = pnand %p286_p9, %p283_p8 }
  0x19   :  { %291 = shalt.err (!%p288_p10)
}
  0x1a   :  { %s292_s4 = scalar_lea.vmem %s28_s24, 2048  ;;  %p297_p12 = scmp.lt.s32.totalorder %s28_s24, %s28_s24 }
  0x1b   :  { %p293_p11 = scmp.ne.s32.totalorder %s28_s24, %s292_s4  ;;  %p298_p13 = scmp.lt.s32.totalorder %s292_s4, %s292_s4 }
  0x1d   :  { %p299_p0 = por %p298_p13, %p297_p12 }
  0x1f   :  { %p300_p1 = pnand %p299_p0, %p293_p11 }
  0x21   :  { %303 = shalt.err (!%p300_p1)
}
  0x22   :  { %33 = dma.hbm_to_vmem [thread:$0]  %s398_s1, 2048, %s28_s24, [#allocation7], %s333_s19, %s333_s19, %s334_s20  }
  0x23   :  { %326 = dma.done.wait [#allocation4], 256  }
  0x24   :  { %327 = vsyncadd [#allocation4], 4294967040 }
  0x25   :  { %328 = dma.done.wait [#allocation7], 2048  }
  0x26   :  { %329 = vsyncadd [#allocation7], 4294965248  ;;  %v50_v0 = vld [vmem:[#allocation6] sm:$0xff]  ;;  %v51_v1 = vld [vmem:[#allocation6 + $0x8] sm:$0xff]  ;;  %s336_s1 = smov [#allocation8]  }
  0x27   :  { %v52_v2 = vld [vmem:[#allocation6 + $0x10] sm:$0xff]  ;;  %v223_v3 = vpack.c.bf16 %v51_v1, %v50_v0  ;;  %v53_v4 = vld [vmem:[#allocation6 + $0x18] sm:$0xff]  ;;  %v54_v7 = vld [vmem:[#allocation6 + $0x20] sm:$0xff]  ;;  %s157_s6 = sshll.u32 %s336_s1, 4  ;;  %s158_s6 = int_to_ptr.vmem [resolvable:$true] %s157_s6 }
  0x28   :  { %v227_v5 = vpack.c.bf16 %v53_v4, %v52_v2  ;;  %v48_v6 = vld [vmem:[#allocation3] sm:$0xff]  ;;  %v55_v8 = vld [vmem:[#allocation6 + $0x28] sm:$0xff]  ;;  %v57_v11 = vld [vmem:[#allocation6 + $0x38] sm:$0xff]  ;;  %s304_s7 = scalar_lea.vmem %s158_s6, 256  ;;  %p309_p3 = scmp.lt.s32.totalorder %s158_s6, %s158_s6 }
  0x29   :  { %224 = vmatprep.subr.bf16.mxu0 %v223_v3  ;;  %220 = vmatprep.mubr.f32.mxu0 %v48_v6  ;;  %v231_v9 = vpack.c.bf16 %v55_v8, %v54_v7  ;;  %v56_v10 = vld [vmem:[#allocation6 + $0x30] sm:$0xff]  ;;  %v58_v13 = vld [vmem:[#allocation6 + $0x40] sm:$0xff]  ;;  %v59_v14 = vld [vmem:[#allocation6 + $0x48] sm:$0xff]  ;;  %p305_p2 = scmp.ne.s32.totalorder %s158_s6, %s304_s7  ;;  %p310_p4 = scmp.lt.s32.totalorder %s304_s7, %s304_s7 }
  0x2a   :  { %226 = vmatpush3.bf16.xpose.msra.mxu0 %v223_v3  ;;  %v235_v12 = vpack.c.bf16 %v57_v11, %v56_v10  ;;  %v239_v15 = vpack.c.bf16 %v59_v14, %v58_v13  ;;  %v60_v16 = vld [vmem:[#allocation6 + $0x50] sm:$0xff]  ;;  %v61_v17 = vld [vmem:[#allocation6 + $0x58] sm:$0xff]  ;;  %v62_v19 = vld [vmem:[#allocation6 + $0x60] sm:$0xff] }
  0x2b   :  { %228 = vmatprep.subr.bf16.mxu0 %v227_v5  ;;  %v243_v18 = vpack.c.bf16 %v61_v17, %v60_v16  ;;  %v63_v20 = vld [vmem:[#allocation6 + $0x68] sm:$0xff]  ;;  %v64_v22 = vld [vmem:[#allocation6 + $0x70] sm:$0xff]  ;;  %v65_v23 = vld [vmem:[#allocation6 + $0x78] sm:$0xff]  ;;  %p311_p5 = por %p310_p4, %p309_p3 }
  0x2c   :  { %v247_v21 = vpack.c.bf16 %v63_v20, %v62_v19  ;;  %v251_v24 = vpack.c.bf16 %v65_v23, %v64_v22  ;;  %v49_v25 = vld [vmem:[#allocation3 + $0x8] sm:$0xff] }
  0x2d   :  { %p312_p6 = pnand %p311_p5, %p305_p2 }
  0x32   :  { %230 = vmatpush3.bf16.xpose.msra.mxu0 %v227_v5 }
  0x33   :  { %232 = vmatprep.subr.bf16.mxu0 %v231_v9 }
  0x3a   :  { %234 = vmatpush3.bf16.xpose.msra.mxu0 %v231_v9 }
  0x3b   :  { %236 = vmatprep.subr.bf16.mxu0 %v235_v12 }
  0x42   :  { %238 = vmatpush3.bf16.xpose.msra.mxu0 %v235_v12 }
  0x43   :  { %240 = vmatprep.subr.bf16.mxu0 %v239_v15 }
  0x4a   :  { %242 = vmatpush3.bf16.xpose.msra.mxu0 %v239_v15 }
  0x4b   :  { %244 = vmatprep.subr.bf16.mxu0 %v243_v18 }
  0x52   :  { %246 = vmatpush3.bf16.xpose.msra.mxu0 %v243_v18 }
  0x53   :  { %248 = vmatprep.subr.bf16.mxu0 %v247_v21 }
  0x5a   :  { %250 = vmatpush3.bf16.xpose.msra.mxu0 %v247_v21 }
  0x5b   :  { %252 = vmatprep.subr.bf16.mxu0 %v251_v24 }
  0x62   :  { %254 = vmatpush3.bf16.xpose.msra.mxu0 %v251_v24 }
  0x69   :  { %221 = vmatmul.mubr.f32.vlgmr.msra.gmra.mrb[0].mxu0 %v49_v25 }
 0x13c   :  { %v222_v26 = vpop.f32.mrb[0].mxu0 }
 0x13d   :  { %151 = vst [vmem:[#allocation8 + $0x8] sm:$0xff] %v222_v26  ;;  %v132_v27 = vpop.f32.mrb[1].mxu0 }
 0x13e   :  { %150 = vst [vmem:[#allocation8] sm:$0xff] %v132_v27 }
 0x13f   :  { %315 = shalt.err (!%p312_p6)
}
 0x140   :  { %s316_s10 = scalar_lea.hbm %s399_s2, 256 }
 0x141   :  { %p317_p7 = scmp.ne.s32.totalorder %s399_s2, %s316_s10  ;;  %p320_p8 = scmp.lt.u32.totalorder %s316_s10, %s399_s2 }
 0x143   :  { %p322_p9 = pnand %p320_p8, %p317_p7 }
 0x145   :  { %325 = shalt.err (!%p322_p9)
}
 0x146   :  { %163 = dma.vmem_to_hbm [thread:$0]  %s158_s6, 256, %s399_s2, [#allocation5], %s333_s19, %s333_s19, %s334_s20  }
 0x147   :  { %330 = dma.done.wait [#allocation5], 256  }
 0x148   :  { %331 = vsyncadd [#allocation5], 4294967040 }
 0x149   :  { %167 = vsyncpa [#allocation4], 1 }
 0x14a   :  { %168 = vsyncpa [#allocation7], 1 }
 0x14b   :  { %169 = vsyncpa [#allocation5], 1 }

</bundles_post_ra>
